<compile_context>
chip_gen: v7x
topology: tpu7x:2x2x1
jax: 0.10.0
libtpu: 0.0.40
codegen_flags: <defaults>
</compile_context>

<pallas_src>
import functools

import jax
import jax.numpy as jnp
import numpy as np
from jax.experimental import pallas as pl
from jax.experimental.pallas import tpu as pltpu

# ----------------------------- problem sizes -----------------------------
B = 8          # batch
NX = 16        # state dim
NU = 4         # input dim
ND = 2         # disturbance dim
NY = 8         # observation dim
T = 2          # timedelay
NSTEPS = 8     # rollout length (taken from Yf.shape[0])

FX = (T + 1) * NX   # size of x_delayed
FU = (T + 1) * NU   # size of u_delayed
FD = (T + 1) * ND   # size of d_delayed


# ------------------------------ Pallas kernel ------------------------------
def _ssm_kernel(nsteps, nx, ny, tpo,
                xtd0_ref, ud_ref, wud_ref, bx_ref, wxy_ref, by_ref,
                xout_ref, yout_ref):
    """Single-invocation rollout.

    xtd0_ref : (B, (T+1)*nx)            initial flattened state window
    ud_ref   : (nsteps*B, (T+1)*(nu+nd)) all delayed u/d features, stacked by step
    wud_ref  : ((T+1)*(nu+nd), nx)       fxud rows for the u/d feature block
    bx_ref   : (1, nx)                   fxud bias
    wxy_ref  : ((T+1)*nx, nx+ny)         [fxud x-block | fy] fused weight
    by_ref   : (1, ny)                   fy bias
    xout_ref : (B, nsteps*nx)            lane-dense X_pred slab
    yout_ref : (B, nsteps*ny)            lane-dense Y_pred slab
    """
    nb = xtd0_ref.shape[0]

    # Prologue: u/d contribution (+ fxud bias) for ALL steps — one MXU matmul,
    # hoisted off the serial dependency chain.
    ud_bias = (jnp.dot(ud_ref[...], wud_ref[...],
                       preferred_element_type=jnp.float32)
               + bx_ref[...])                                 # (nsteps*nb, nx)

    wxy = wxy_ref[...]                                        # (tpo*nx, nx+ny)
    by = by_ref[...]                                          # (1, ny)

    # Rolling state window carried as (T+1) value slices (oldest ... newest).
    win = [xtd0_ref[:, k * nx:(k + 1) * nx] for k in range(tpo)]

    xs, ys = [], []
    for i in range(nsteps):                                   # static unroll
        x_delayed = jnp.concatenate(win, axis=-1)             # (nb, tpo*nx)
        # Single fused MXU push: [x_next_contrib | y] from the OLD window.
        res = jnp.dot(x_delayed, wxy, preferred_element_type=jnp.float32)
        x_new = res[:, :nx] + ud_bias[i * nb:(i + 1) * nb, :]  # (nb, nx)
        y = res[:, nx:] + by                                    # (nb, ny)
        xs.append(x_new)
        ys.append(y)
        win = win[1:] + [x_new]                                # shift window

    # One lane-dense writeback per output.
    xout_ref[...] = jnp.concatenate(xs, axis=-1)               # (nb, nsteps*nx)
    yout_ref[...] = jnp.concatenate(ys, axis=-1)               # (nb, nsteps*ny)


def time_delay_black_ssm(Xtd, Yf, Uf, Up, Df, Dp,
                         W_fxud, b_fxud, W_fy, b_fy,
                         timedelay=T):
    """Wrapper: window construction & weight split in JAX, rollout in Pallas."""
    nsteps = Yf.shape[0]
    nb = Xtd.shape[1]
    nx = W_fxud.shape[1]
    ny = W_fy.shape[1]
    nu = Uf.shape[-1]
    nd = Df.shape[-1]
    tpo = timedelay + 1

    # Utd / Dtd exactly as in the torch forward.
    Utd = jnp.concatenate([Up[-timedelay:], Uf], axis=0)   # (T+nsteps, B, nu)
    Dtd = jnp.concatenate([Dp[-timedelay:], Df], axis=0)   # (T+nsteps, B, nd)

    # Sliding delay windows via a single gather (no per-step Python XLA ops).
    idx = jnp.arange(nsteps)[:, None] + jnp.arange(tpo)[None, :]   # (nsteps, T+1)
    u_del = Utd[idx].transpose(0, 2, 1, 3).reshape(nsteps, nb, tpo * nu)
    d_del = Dtd[idx].transpose(0, 2, 1, 3).reshape(nsteps, nb, tpo * nd)
    ud_all = jnp.concatenate([u_del, d_del], axis=-1)
    ud_all = ud_all.reshape(nsteps * nb, tpo * (nu + nd))   # (nsteps*B, FU+FD)

    # Split fxud weights by [x_delayed | u_delayed, d_delayed] row blocks and
    # fuse the x-block with the fy weight (one MXU push per serial step).
    fx = tpo * nx
    Wx = W_fxud[:fx]                                        # (FX, nx)
    Wud = W_fxud[fx:]                                       # (FU+FD, nx)
    Wxy = jnp.concatenate([Wx, W_fy], axis=1)               # (FX, nx+ny)
    bx = b_fxud.reshape(1, -1)
    by = b_fy.reshape(1, -1)

    # Flatten initial state window (concat over time along feature dim).
    xtd0 = Xtd.transpose(1, 0, 2).reshape(nb, fx)           # (B, FX)

    kernel = functools.partial(_ssm_kernel, nsteps, nx, ny, tpo)

    grid_spec = pltpu.PrefetchScalarGridSpec(
        num_scalar_prefetch=0,
        grid=(1,),                                          # whole rollout in one step
        in_specs=[
            pl.BlockSpec(xtd0.shape, lambda i: (0, 0)),
            pl.BlockSpec(ud_all.shape, lambda i: (0, 0)),
            pl.BlockSpec(Wud.shape, lambda i: (0, 0)),
            pl.BlockSpec(bx.shape, lambda i: (0, 0)),
            pl.BlockSpec(Wxy.shape, lambda i: (0, 0)),
            pl.BlockSpec(by.shape, lambda i: (0, 0)),
        ],
        out_specs=[
            pl.BlockSpec((nb, nsteps * nx), lambda i: (0, 0)),
            pl.BlockSpec((nb, nsteps * ny), lambda i: (0, 0)),
        ],
    )

    Xout, Yout = pl.pallas_call(
        kernel,
        out_shape=(
            jax.ShapeDtypeStruct((nb, nsteps * nx), jnp.float32),
            jax.ShapeDtypeStruct((nb, nsteps * ny), jnp.float32),
        ),
        grid_spec=grid_spec,
        compiler_params=pltpu.CompilerParams(
            dimension_semantics=("arbitrary",)),            # sequential recurrence
    )(xtd0, ud_all, Wud, bx, Wxy, by)

    # Lane-dense slabs -> time-major (nsteps, B, feat), matching torch layout.
    X_pred = Xout.reshape(nb, nsteps, nx).transpose(1, 0, 2)
    Y_pred = Yout.reshape(nb, nsteps, ny).transpose(1, 0, 2)

    # reg_error: fxud/fy are plain linear maps (no reg_error attr) -> sum([]) == 0
    reg_error = jnp.float32(0.0)
    return {"X_pred_black_ssm": X_pred,
            "Y_pred_black_ssm": Y_pred,
            "reg_error_black_ssm": reg_error}


# ---------------- pure-JAX reference (torch semantics) ----------------
def reference_rollout(Xtd, Utd, Dtd, W_fxud, b_fxud, W_fy, b_fy, nsteps, timedelay):
    nb = Xtd.shape[1]
    Xtd_cur = Xtd
    Xs, Ys = [], []
    for i in range(nsteps):
        x_delayed = Xtd_cur.transpose(1, 0, 2).reshape(nb, -1)
        u_delayed = Utd[i:i + timedelay + 1].transpose(1, 0, 2).reshape(nb, -1)
        d_delayed = Dtd[i:i + timedelay + 1].transpose(1, 0, 2).reshape(nb, -1)
        feats = jnp.concatenate([x_delayed, u_delayed, d_delayed], axis=-1)
        x = feats @ W_fxud + b_fxud
        Xtd_cur = jnp.concatenate([Xtd_cur, x[None]], axis=0)[1:]
        y = x_delayed @ W_fy + b_fy
        Xs.append(x)
        Ys.append(y)
    return jnp.stack(Xs), jnp.stack(Ys)


# ------------------------------------ main ------------------------------------
if __name__ == "__main__":
    key = jax.random.PRNGKey(0)
    ks = jax.random.split(key, 10)

    # data dict tensors (time-major, like torch)
    Xtd = jax.random.normal(ks[0], (T + 1, B, NX), jnp.float32)
    Yf = jax.random.normal(ks[1], (NSTEPS, B, NY), jnp.float32)     # only shape[0] used
    Uf = jax.random.normal(ks[2], (NSTEPS, B, NU), jnp.float32)
    Up = jax.random.normal(ks[3], (NSTEPS, B, NU), jnp.float32)
    Df = jax.random.normal(ks[4], (NSTEPS, B, ND), jnp.float32)
    Dp = jax.random.normal(ks[5], (NSTEPS, B, ND), jnp.float32)

    # deterministic "Linear" parameters: fxud: (F_total -> nx), fy: ((T+1)*nx -> ny)
    F_total = FX + FU + FD
    W_fxud = 0.1 * jax.random.normal(ks[6], (F_total, NX), jnp.float32)
    b_fxud = 0.1 * jax.random.normal(ks[7], (NX,), jnp.float32)
    W_fy = 0.1 * jax.random.normal(ks[8], (FX, NY), jnp.float32)
    b_fy = 0.1 * jax.random.normal(ks[9], (NY,), jnp.float32)

    out = time_delay_black_ssm(Xtd, Yf, Uf, Up, Df, Dp, W_fxud, b_fxud, W_fy, b_fy)
    jax.block_until_ready(out)

    # correctness check against torch-semantics reference
    Utd = jnp.concatenate([Up[-T:], Uf], axis=0)
    Dtd = jnp.concatenate([Dp[-T:], Df], axis=0)
    X_ref, Y_ref = reference_rollout(Xtd, Utd, Dtd, W_fxud, b_fxud, W_fy, b_fy, NSTEPS, T)

    assert out["X_pred_black_ssm"].shape == (NSTEPS, B, NX)
    assert out["Y_pred_black_ssm"].shape == (NSTEPS, B, NY)
    assert np.allclose(np.asarray(out["X_pred_black_ssm"]), np.asarray(X_ref),
                       atol=1e-4, rtol=1e-4)
    assert np.allclose(np.asarray(out["Y_pred_black_ssm"]), np.asarray(Y_ref),
                       atol=1e-4, rtol=1e-4)

    print("KERNEL_OK")
</pallas_src>

<mosaic_0001>
module attributes {stable_mosaic.version = 11 : i64} {
  func.func @_ssm_kernel(%arg0: i32, %arg1: memref<8x48xf32, #tpu.memory_space<vmem>>, %arg2: memref<64x18xf32, #tpu.memory_space<vmem>>, %arg3: memref<18x16xf32, #tpu.memory_space<vmem>>, %arg4: memref<1x16xf32, #tpu.memory_space<vmem>>, %arg5: memref<48x24xf32, #tpu.memory_space<vmem>>, %arg6: memref<1x8xf32, #tpu.memory_space<vmem>>, %arg7: memref<8x128xf32, #tpu.memory_space<vmem>>, %arg8: memref<8x64xf32, #tpu.memory_space<vmem>>) attributes {dimension_semantics = [#tpu.dimension_semantics<arbitrary>], iteration_bounds = array<i64: 1>, scalar_prefetch = 0 : i64, scratch_operands = 0 : i64, tpu.core_type = #tpu.core_type<tc>, window_params = [{pipeline_mode = #tpu.pipeline_mode<synchronous>, transform_indices = @transform_0, window_bounds = array<i64: 8, 48>}, {pipeline_mode = #tpu.pipeline_mode<synchronous>, transform_indices = @transform_1, window_bounds = array<i64: 64, 18>}, {pipeline_mode = #tpu.pipeline_mode<synchronous>, transform_indices = @transform_2, window_bounds = array<i64: 18, 16>}, {pipeline_mode = #tpu.pipeline_mode<synchronous>, transform_indices = @transform_3, window_bounds = array<i64: 1, 16>}, {pipeline_mode = #tpu.pipeline_mode<synchronous>, transform_indices = @transform_4, window_bounds = array<i64: 48, 24>}, {pipeline_mode = #tpu.pipeline_mode<synchronous>, transform_indices = @transform_5, window_bounds = array<i64: 1, 8>}, {pipeline_mode = #tpu.pipeline_mode<synchronous>, transform_indices = @transform_6, window_bounds = array<i64: 8, 128>}, {pipeline_mode = #tpu.pipeline_mode<synchronous>, transform_indices = @transform_7, window_bounds = array<i64: 8, 64>}]} {
    %c0 = arith.constant 0 : index
    %c0_0 = arith.constant 0 : index
    %0 = vector.load %arg2[%c0, %c0_0] : memref<64x18xf32, #tpu.memory_space<vmem>>, vector<64x18xf32>
    %c0_1 = arith.constant 0 : index
    %c0_2 = arith.constant 0 : index
    %1 = vector.load %arg3[%c0_1, %c0_2] : memref<18x16xf32, #tpu.memory_space<vmem>>, vector<18x16xf32>
    %cst = arith.constant dense<0.000000e+00> : vector<64x16xf32>
    %2 = tpu.matmul %0, %1, %cst {dimension_numbers = #tpu.dot_dimension_numbers<[1], [0], [0], [1], [0, 0, 1, 1], [], []>} : vector<64x18xf32>, vector<18x16xf32>, vector<64x16xf32> -> vector<64x16xf32>
    %c0_3 = arith.constant 0 : index
    %c0_4 = arith.constant 0 : index
    %3 = vector.load %arg4[%c0_3, %c0_4] : memref<1x16xf32, #tpu.memory_space<vmem>>, vector<1x16xf32>
    %4 = vector.broadcast %3 : vector<1x16xf32> to vector<64x16xf32>
    %5 = arith.addf %2, %4 : vector<64x16xf32>
    %c0_5 = arith.constant 0 : index
    %c0_6 = arith.constant 0 : index
    %6 = vector.load %arg5[%c0_5, %c0_6] : memref<48x24xf32, #tpu.memory_space<vmem>>, vector<48x24xf32>
    %c0_7 = arith.constant 0 : index
    %c0_8 = arith.constant 0 : index
    %7 = vector.load %arg6[%c0_7, %c0_8] : memref<1x8xf32, #tpu.memory_space<vmem>>, vector<1x8xf32>
    %c0_9 = arith.constant 0 : index
    %c0_10 = arith.constant 0 : index
    %8 = vector.load %arg1[%c0_9, %c0_10] : memref<8x48xf32, #tpu.memory_space<vmem>>, vector<8x16xf32>
    %c0_11 = arith.constant 0 : index
    %c16 = arith.constant 16 : index
    %9 = vector.load %arg1[%c0_11, %c16] : memref<8x48xf32, #tpu.memory_space<vmem>>, vector<8x16xf32>
    %c0_12 = arith.constant 0 : index
    %c32 = arith.constant 32 : index
    %10 = vector.load %arg1[%c0_12, %c32] : memref<8x48xf32, #tpu.memory_space<vmem>>, vector<8x16xf32>
    %11 = tpu.concatenate %8, %9, %10 in 1 : vector<8x16xf32>, vector<8x16xf32>, vector<8x16xf32> -> vector<8x48xf32>
    %cst_13 = arith.constant dense<0.000000e+00> : vector<8x24xf32>
    %12 = tpu.matmul %11, %6, %cst_13 {dimension_numbers = #tpu.dot_dimension_numbers<[1], [0], [0], [1], [0, 0, 1, 1], [], []>} : vector<8x48xf32>, vector<48x24xf32>, vector<8x24xf32> -> vector<8x24xf32>
    %13 = vector.extract_strided_slice %12 {offsets = [0, 0], sizes = [8, 16], strides = [1, 1]} : vector<8x24xf32> to vector<8x16xf32>
    %14 = vector.extract_strided_slice %5 {offsets = [0, 0], sizes = [8, 16], strides = [1, 1]} : vector<64x16xf32> to vector<8x16xf32>
    %15 = arith.addf %13, %14 : vector<8x16xf32>
    %16 = vector.extract_strided_slice %12 {offsets = [0, 16], sizes = [8, 8], strides = [1, 1]} : vector<8x24xf32> to vector<8x8xf32>
    %17 = vector.broadcast %7 : vector<1x8xf32> to vector<8x8xf32>
    %18 = arith.addf %16, %17 : vector<8x8xf32>
    %19 = tpu.concatenate %9, %10, %15 in 1 : vector<8x16xf32>, vector<8x16xf32>, vector<8x16xf32> -> vector<8x48xf32>
    %cst_14 = arith.constant dense<0.000000e+00> : vector<8x24xf32>
    %20 = tpu.matmul %19, %6, %cst_14 {dimension_numbers = #tpu.dot_dimension_numbers<[1], [0], [0], [1], [0, 0, 1, 1], [], []>} : vector<8x48xf32>, vector<48x24xf32>, vector<8x24xf32> -> vector<8x24xf32>
    %21 = vector.extract_strided_slice %20 {offsets = [0, 0], sizes = [8, 16], strides = [1, 1]} : vector<8x24xf32> to vector<8x16xf32>
    %22 = vector.extract_strided_slice %5 {offsets = [8, 0], sizes = [8, 16], strides = [1, 1]} : vector<64x16xf32> to vector<8x16xf32>
    %23 = arith.addf %21, %22 : vector<8x16xf32>
    %24 = vector.extract_strided_slice %20 {offsets = [0, 16], sizes = [8, 8], strides = [1, 1]} : vector<8x24xf32> to vector<8x8xf32>
    %25 = vector.broadcast %7 : vector<1x8xf32> to vector<8x8xf32>
    %26 = arith.addf %24, %25 : vector<8x8xf32>
    %27 = tpu.concatenate %10, %15, %23 in 1 : vector<8x16xf32>, vector<8x16xf32>, vector<8x16xf32> -> vector<8x48xf32>
    %cst_15 = arith.constant dense<0.000000e+00> : vector<8x24xf32>
    %28 = tpu.matmul %27, %6, %cst_15 {dimension_numbers = #tpu.dot_dimension_numbers<[1], [0], [0], [1], [0, 0, 1, 1], [], []>} : vector<8x48xf32>, vector<48x24xf32>, vector<8x24xf32> -> vector<8x24xf32>
    %29 = vector.extract_strided_slice %28 {offsets = [0, 0], sizes = [8, 16], strides = [1, 1]} : vector<8x24xf32> to vector<8x16xf32>
    %30 = vector.extract_strided_slice %5 {offsets = [16, 0], sizes = [8, 16], strides = [1, 1]} : vector<64x16xf32> to vector<8x16xf32>
    %31 = arith.addf %29, %30 : vector<8x16xf32>
    %32 = vector.extract_strided_slice %28 {offsets = [0, 16], sizes = [8, 8], strides = [1, 1]} : vector<8x24xf32> to vector<8x8xf32>
    %33 = vector.broadcast %7 : vector<1x8xf32> to vector<8x8xf32>
    %34 = arith.addf %32, %33 : vector<8x8xf32>
    %35 = tpu.concatenate %15, %23, %31 in 1 : vector<8x16xf32>, vector<8x16xf32>, vector<8x16xf32> -> vector<8x48xf32>
    %cst_16 = arith.constant dense<0.000000e+00> : vector<8x24xf32>
    %36 = tpu.matmul %35, %6, %cst_16 {dimension_numbers = #tpu.dot_dimension_numbers<[1], [0], [0], [1], [0, 0, 1, 1], [], []>} : vector<8x48xf32>, vector<48x24xf32>, vector<8x24xf32> -> vector<8x24xf32>
    %37 = vector.extract_strided_slice %36 {offsets = [0, 0], sizes = [8, 16], strides = [1, 1]} : vector<8x24xf32> to vector<8x16xf32>
    %38 = vector.extract_strided_slice %5 {offsets = [24, 0], sizes = [8, 16], strides = [1, 1]} : vector<64x16xf32> to vector<8x16xf32>
    %39 = arith.addf %37, %38 : vector<8x16xf32>
    %40 = vector.extract_strided_slice %36 {offsets = [0, 16], sizes = [8, 8], strides = [1, 1]} : vector<8x24xf32> to vector<8x8xf32>
    %41 = vector.broadcast %7 : vector<1x8xf32> to vector<8x8xf32>
    %42 = arith.addf %40, %41 : vector<8x8xf32>
    %43 = tpu.concatenate %23, %31, %39 in 1 : vector<8x16xf32>, vector<8x16xf32>, vector<8x16xf32> -> vector<8x48xf32>
    %cst_17 = arith.constant dense<0.000000e+00> : vector<8x24xf32>
    %44 = tpu.matmul %43, %6, %cst_17 {dimension_numbers = #tpu.dot_dimension_numbers<[1], [0], [0], [1], [0, 0, 1, 1], [], []>} : vector<8x48xf32>, vector<48x24xf32>, vector<8x24xf32> -> vector<8x24xf32>
    %45 = vector.extract_strided_slice %44 {offsets = [0, 0], sizes = [8, 16], strides = [1, 1]} : vector<8x24xf32> to vector<8x16xf32>
    %46 = vector.extract_strided_slice %5 {offsets = [32, 0], sizes = [8, 16], strides = [1, 1]} : vector<64x16xf32> to vector<8x16xf32>
    %47 = arith.addf %45, %46 : vector<8x16xf32>
    %48 = vector.extract_strided_slice %44 {offsets = [0, 16], sizes = [8, 8], strides = [1, 1]} : vector<8x24xf32> to vector<8x8xf32>
    %49 = vector.broadcast %7 : vector<1x8xf32> to vector<8x8xf32>
    %50 = arith.addf %48, %49 : vector<8x8xf32>
    %51 = tpu.concatenate %31, %39, %47 in 1 : vector<8x16xf32>, vector<8x16xf32>, vector<8x16xf32> -> vector<8x48xf32>
    %cst_18 = arith.constant dense<0.000000e+00> : vector<8x24xf32>
    %52 = tpu.matmul %51, %6, %cst_18 {dimension_numbers = #tpu.dot_dimension_numbers<[1], [0], [0], [1], [0, 0, 1, 1], [], []>} : vector<8x48xf32>, vector<48x24xf32>, vector<8x24xf32> -> vector<8x24xf32>
    %53 = vector.extract_strided_slice %52 {offsets = [0, 0], sizes = [8, 16], strides = [1, 1]} : vector<8x24xf32> to vector<8x16xf32>
    %54 = vector.extract_strided_slice %5 {offsets = [40, 0], sizes = [8, 16], strides = [1, 1]} : vector<64x16xf32> to vector<8x16xf32>
    %55 = arith.addf %53, %54 : vector<8x16xf32>
    %56 = vector.extract_strided_slice %52 {offsets = [0, 16], sizes = [8, 8], strides = [1, 1]} : vector<8x24xf32> to vector<8x8xf32>
    %57 = vector.broadcast %7 : vector<1x8xf32> to vector<8x8xf32>
    %58 = arith.addf %56, %57 : vector<8x8xf32>
    %59 = tpu.concatenate %39, %47, %55 in 1 : vector<8x16xf32>, vector<8x16xf32>, vector<8x16xf32> -> vector<8x48xf32>
    %cst_19 = arith.constant dense<0.000000e+00> : vector<8x24xf32>
    %60 = tpu.matmul %59, %6, %cst_19 {dimension_numbers = #tpu.dot_dimension_numbers<[1], [0], [0], [1], [0, 0, 1, 1], [], []>} : vector<8x48xf32>, vector<48x24xf32>, vector<8x24xf32> -> vector<8x24xf32>
    %61 = vector.extract_strided_slice %60 {offsets = [0, 0], sizes = [8, 16], strides = [1, 1]} : vector<8x24xf32> to vector<8x16xf32>
    %62 = vector.extract_strided_slice %5 {offsets = [48, 0], sizes = [8, 16], strides = [1, 1]} : vector<64x16xf32> to vector<8x16xf32>
    %63 = arith.addf %61, %62 : vector<8x16xf32>
    %64 = vector.extract_strided_slice %60 {offsets = [0, 16], sizes = [8, 8], strides = [1, 1]} : vector<8x24xf32> to vector<8x8xf32>
    %65 = vector.broadcast %7 : vector<1x8xf32> to vector<8x8xf32>
    %66 = arith.addf %64, %65 : vector<8x8xf32>
    %67 = tpu.concatenate %47, %55, %63 in 1 : vector<8x16xf32>, vector<8x16xf32>, vector<8x16xf32> -> vector<8x48xf32>
    %cst_20 = arith.constant dense<0.000000e+00> : vector<8x24xf32>
    %68 = tpu.matmul %67, %6, %cst_20 {dimension_numbers = #tpu.dot_dimension_numbers<[1], [0], [0], [1], [0, 0, 1, 1], [], []>} : vector<8x48xf32>, vector<48x24xf32>, vector<8x24xf32> -> vector<8x24xf32>
    %69 = vector.extract_strided_slice %68 {offsets = [0, 0], sizes = [8, 16], strides = [1, 1]} : vector<8x24xf32> to vector<8x16xf32>
    %70 = vector.extract_strided_slice %5 {offsets = [56, 0], sizes = [8, 16], strides = [1, 1]} : vector<64x16xf32> to vector<8x16xf32>
    %71 = arith.addf %69, %70 : vector<8x16xf32>
    %72 = vector.extract_strided_slice %68 {offsets = [0, 16], sizes = [8, 8], strides = [1, 1]} : vector<8x24xf32> to vector<8x8xf32>
    %73 = vector.broadcast %7 : vector<1x8xf32> to vector<8x8xf32>
    %74 = arith.addf %72, %73 : vector<8x8xf32>
    %75 = tpu.concatenate %15, %23, %31, %39, %47, %55, %63, %71 in 1 : vector<8x16xf32>, vector<8x16xf32>, vector<8x16xf32>, vector<8x16xf32>, vector<8x16xf32>, vector<8x16xf32>, vector<8x16xf32>, vector<8x16xf32> -> vector<8x128xf32>
    %c0_21 = arith.constant 0 : index
    %c0_22 = arith.constant 0 : index
    %76 = vector.load %arg7[%c0_21, %c0_22] : memref<8x128xf32, #tpu.memory_space<vmem>>, vector<8x128xf32>
    tpu.vector_store %arg7[%c0_21, %c0_22], %75 {strides = array<i32>} : memref<8x128xf32, #tpu.memory_space<vmem>>, vector<8x128xf32>,
    %77 = tpu.concatenate %18, %26, %34, %42, %50, %58, %66, %74 in 1 : vector<8x8xf32>, vector<8x8xf32>, vector<8x8xf32>, vector<8x8xf32>, vector<8x8xf32>, vector<8x8xf32>, vector<8x8xf32>, vector<8x8xf32> -> vector<8x64xf32>
    %c0_23 = arith.constant 0 : index
    %c0_24 = arith.constant 0 : index
    %78 = vector.load %arg8[%c0_23, %c0_24] : memref<8x64xf32, #tpu.memory_space<vmem>>, vector<8x64xf32>
    tpu.vector_store %arg8[%c0_23, %c0_24], %77 {strides = array<i32>} : memref<8x64xf32, #tpu.memory_space<vmem>>, vector<8x64xf32>,
    return
  }
  func.func @transform_0(%arg0: i32) -> (i32, i32) {
    %c0_i32 = arith.constant 0 : i32
    %c0_i32_0 = arith.constant 0 : i32
    %c0_i32_1 = arith.constant 0 : i32
    return %c0_i32, %c0_i32_0 : i32, i32
  }
  func.func @transform_1(%arg0: i32) -> (i32, i32) {
    %c0_i32 = arith.constant 0 : i32
    %c0_i32_0 = arith.constant 0 : i32
    %c0_i32_1 = arith.constant 0 : i32
    return %c0_i32, %c0_i32_0 : i32, i32
  }
  func.func @transform_2(%arg0: i32) -> (i32, i32) {
    %c0_i32 = arith.constant 0 : i32
    %c0_i32_0 = arith.constant 0 : i32
    %c0_i32_1 = arith.constant 0 : i32
    return %c0_i32, %c0_i32_0 : i32, i32
  }
  func.func @transform_3(%arg0: i32) -> (i32, i32) {
    %c0_i32 = arith.constant 0 : i32
    %c0_i32_0 = arith.constant 0 : i32
    %c0_i32_1 = arith.constant 0 : i32
    return %c0_i32, %c0_i32_0 : i32, i32
  }
  func.func @transform_4(%arg0: i32) -> (i32, i32) {
    %c0_i32 = arith.constant 0 : i32
    %c0_i32_0 = arith.constant 0 : i32
    %c0_i32_1 = arith.constant 0 : i32
    return %c0_i32, %c0_i32_0 : i32, i32
  }
  func.func @transform_5(%arg0: i32) -> (i32, i32) {
    %c0_i32 = arith.constant 0 : i32
    %c0_i32_0 = arith.constant 0 : i32
    %c0_i32_1 = arith.constant 0 : i32
    return %c0_i32, %c0_i32_0 : i32, i32
  }
  func.func @transform_6(%arg0: i32) -> (i32, i32) {
    %c0_i32 = arith.constant 0 : i32
    %c0_i32_0 = arith.constant 0 : i32
    %c0_i32_1 = arith.constant 0 : i32
    return %c0_i32, %c0_i32_0 : i32, i32
  }
  func.func @transform_7(%arg0: i32) -> (i32, i32) {
    %c0_i32 = arith.constant 0 : i32
    %c0_i32_0 = arith.constant 0 : i32
    %c0_i32_1 = arith.constant 0 : i32
    return %c0_i32, %c0_i32_0 : i32, i32
  }
}

</mosaic_0001>

<bundles_post_ra>
// kernel: tpu_custom_call.1
= control target key start
LH: loop header
LB: loop body
LE: loop exit
PB: predicated region body
PF: predicated region fallthrough
CT: control target
= control target key end

     0   :  { %13 = vsyncpa [#allocation3], 0  ;;  %vm45_vm0 = vcmask 146432   ;;  %vm70_vm1 = vcmask 1041408   ;;  %s1641_s0 = inlined_call_operand.vmem [shape: f32[8,48], index: 0, kind: input, shape index: {}]   ;;  %s1642_s1 = inlined_call_operand.vmem [shape: f32[64,18], index: 1, kind: input, shape index: {}]   ;;  %s1643_s2 = inlined_call_operand.vmem [shape: f32[18,16], index: 2, kind: input, shape index: {}]   ;;  %s1644_s3 = inlined_call_operand.vmem [shape: f32[1,16], index: 3, kind: input, shape index: {}]   ;;  %s1645_s4 = inlined_call_operand.vmem [shape: f32[48,24], index: 4, kind: input, shape index: {}]   ;;  %s1646_s5 = inlined_call_operand.vmem [shape: f32[1,8], index: 5, kind: input, shape index: {}]   ;;  %s1647_s6 = inlined_call_operand.hbm [shape: f32[8,128], index: 6, kind: output, shape index: {0}]   ;;  %s1648_s7 = inlined_call_operand.hbm [shape: f32[8,64], index: 7, kind: output, shape index: {1}]  }
   0x1   :  { %v35_v0 = vld [vmem:[%s1643_s2] sm:$0xff]  ;;  %v36_v1 = vld [vmem:[%s1643_s2 + $0x8] sm:$0xff]  ;;  %v33_v3 = vld [vmem:[%s1642_s1 + $0x30] sm:$0xff] }
   0x2   :  { %v1183_v2 = vpack.c.bf16 %v36_v1, %v35_v0  ;;  %v37_v4 = vld [vmem:[%s1643_s2 + $0x10] sm:$0x3]  ;;  %1060 = vmatprep.mubr.msk.f32.mxu1 %vm45_vm0, %v33_v3  ;;  %v179_v5 = vld [vmem:[%s1645_s4] sm:$0xff]  ;;  %v180_v6 = vld [vmem:[%s1645_s4 + $0x8] sm:$0xff] }
   0x3   :  { %v27_v7 = vld [vmem:[%s1642_s1] sm:$0xff] }
   0x4   :  { %1259 = vmatprep.subr.bf16.mxu1 %v1183_v2  ;;  %1184 = vmatprep.subr.bf16.mxu0 %v1183_v2 }
   0x5   :  { %1261 = vmatpush3.bf16.msra.mxu1 %v1183_v2  ;;  %1186 = vmatpush3.bf16.msra.mxu0 %v1183_v2 }
   0x6   :  { %1260 = vmatprep.subr.msk.mxu1 %vm70_vm1, %v37_v4  ;;  %1049 = vmatprep.subr.msk.mxu0 %vm70_vm1, %v37_v4 }
   0x7   :  { %14 = vsyncpa [#allocation5], 0  ;;  %v34_v8 = vld [vmem:[%s1642_s1 + $0x38] sm:$0xff]  ;;  %v1410_v9 = vpack.c.bf16 %v180_v6, %v179_v5  ;;  %1051 = vmatprep.mubr.msk.f32.mxu0 %vm45_vm0, %v27_v7  ;;  %v181_v10 = vld [vmem:[%s1645_s4 + $0x10] sm:$0xff]  ;;  %v1327_v13 = vmov 0.0|0.0   ;;  %vm1328_vm2 = vmmov 0  }
   0x8   :  { %v182_v11 = vld [vmem:[%s1645_s4 + $0x18] sm:$0xff]  ;;  %v28_v12 = vld [vmem:[%s1642_s1 + $0x8] sm:$0xff]  ;;  %v183_v15 = vld [vmem:[%s1645_s4 + $0x20] sm:$0xff]  ;;  %v1329_v17 = vmov 0.0   ;;  %vm190_vm3 = vcmask 392192   ;;  %s1331_s27 = smov 112  }
   0x9   :  { %1262 = vmatpush3.msk.msra.mxu1 %vm70_vm1, %v37_v4  ;;  %1050 = vmatpush3.msk.msra.mxu0 %vm70_vm1, %v37_v4  ;;  %v1427_v14 = vpack.c.bf16 %v182_v11, %v181_v10  ;;  %v184_v16 = vld [vmem:[%s1645_s4 + $0x28] sm:$0xff]  ;;  %v186_v19 = vld [vmem:[%s1641_s0] sm:$0xff]  ;;  %s1330_s0 = smov 96   ;;  %v29_v20 = vld [vmem:[%s1642_s1 + $0x10] sm:$0xff]  ;;  %s1333_s2 = smov 32   ;;  %vm188_vm4 = vcmask 261120  }
   0xa   :  { %1061 = vmatmul.mubr.msk.f32.vlgmr.msra.gmra.mrb[0].mxu1 %vm45_vm0, %v34_v8  ;;  %1187 = vmatprep.subr.bf16.mxu1 %v1327_v13  ;;  %v1442_v18 = vpack.c.bf16 %v184_v16, %v183_v15  ;;  %v30_v21 = vld [vmem:[%s1642_s1 + $0x18] sm:$0xff]  ;;  %v31_v22 = vld [vmem:[%s1642_s1 + $0x20] sm:$0xff]  ;;  %v32_v23 = vld [vmem:[%s1642_s1 + $0x28] sm:$0xff]  ;;  %s1332_s1 = smov 16   ;;  %vm187_vm5 = vcmask 130048   ;;  %s1334_s16 = smov 120  }
   0xb   :  { %1189 = vmatpush3.bf16.msra.mxu1 %v1410_v9  ;;  %1052 = vmatmul.mubr.msk.f32.vlgmr.msra.gmra.mrb[0].mxu0 %vm45_vm0, %v28_v12  ;;  %v1491_v28 = vld [vmem:[%s1644_s3] ss:$0 sm:$0xff]  ;;  %s1335_s17 = smov 8   ;;  %s1337_s18 = smov 48   ;;  %vm919_vm6 = vcmask 64512   ;;  %vm922_vm7 = vcmask 195584  }
   0xc   :  { %1190 = vmatprep.subr.bf16.mxu1 %v1327_v13  ;;  %1075 = vmatprep.mubr.msk.f32.mxu1 %vm1328_vm2, %v1329_v17  ;;  %s1338_s19 = smov 64   ;;  %s1339_s20 = smov 80   ;;  %vm925_vm8 = vcmask 326656   ;;  %vm882_vm9 = vcmask 523264   ;;  %vm884_vm10 = vcmask 654336   ;;  %vm886_vm11 = vcmask 785408  }
   0xd   :  { %1196 = vmatprep.subr.bf16.mxu0 %v1327_v13  ;;  %358 = vrot.lane.b32.xlu1 %v186_v19, %s1330_s0  ;;  %s1340_s21 = smov 40   ;;  %s1341_s22 = smov [#allocation2]   ;;  %vm928_vm12 = vcmask 457728   ;;  %vm888_vm13 = vcmask 916480  }
   0xe   :  { %1198 = vmatpush3.bf16.msra.mxu0 %v1410_v9  ;;  %275 = vrot.lane.b32.xlu0 %v186_v19, %s1331_s27  ;;  %s937_s23 = sshll.u32 %s1341_s22, 4  ;;  %s1342_s24 = smov [#allocation4]   ;;  %s938_s23 = int_to_ptr.vmem [resolvable:$true] %s937_s23 }
   0xf   :  { %1192 = vmatpush3.bf16.msra.mxu1 %v1427_v14  ;;  %1199 = vmatprep.subr.bf16.mxu0 %v1327_v13  ;;  %s947_s25 = sshll.u32 %s1342_s24, 4  ;;  %s1279_s4 = scalar_lea.vmem %s938_s23, 128  ;;  %s948_s25 = int_to_ptr.vmem [resolvable:$true] %s947_s25 }
  0x10   :  { %1193 = vmatprep.subr.bf16.mxu1 %v1327_v13  ;;  %1054 = vmatprep.mubr.msk.f32.mxu0 %vm45_vm0, %v29_v20  ;;  %p1280_p0 = scmp.ne.s32.totalorder %s938_s23, %s1279_s4  ;;  %p1284_p1 = scmp.lt.s32.totalorder %s938_s23, %s938_s23 }
  0x11   :  { %1055 = vmatmul.mubr.msk.f32.gmra.mrb[2].mxu0 %vm45_vm0, %v30_v21  ;;  %p1285_p2 = scmp.lt.s32.totalorder %s1279_s4, %s1279_s4 }
  0x12   :  { %1201 = vmatpush3.bf16.msra.mxu0 %v1427_v14  ;;  %1057 = vmatprep.mubr.msk.f32.mxu0 %vm45_vm0, %v31_v22 }
  0x13   :  { %1195 = vmatpush3.bf16.msra.mxu1 %v1442_v18  ;;  %1202 = vmatprep.subr.bf16.mxu0 %v1327_v13  ;;  %p1286_p3 = por %p1285_p2, %p1284_p1 }
  0x14   :  { %1205 = vmatprep.subr.bf16.mxu1 %v1327_v13 }
  0x15   :  { %1058 = vmatmul.mubr.msk.f32.gmra.mrb[4].mxu0 %vm45_vm0, %v32_v23  ;;  %p1287_p4 = pnand %p1286_p3, %p1280_p0 }
  0x16   :  { %1076 = vmatmul.mubr.msk.f32.vlgmr.msra.gmra.mrb[2].mxu1 %vm190_vm3, %v186_v19  ;;  %1204 = vmatpush3.bf16.msra.mxu0 %v1442_v18 }
  0x17   :  { %1207 = vmatpush3.bf16.msra.mxu1 %v1410_v9  ;;  %1105 = vmatprep.mubr.msk.f32.mxu1 %vm1328_vm2, %v1329_v17 }
  0x18   :  { %1208 = vmatprep.subr.bf16.mxu1 %v1327_v13  ;;  %1214 = vmatprep.subr.bf16.mxu0 %v1327_v13 }
  0x19   :  { %1090 = vmatprep.mubr.msk.f32.mxu0 %vm1328_vm2, %v1329_v17 }
  0x1b   :  { %1210 = vmatpush3.bf16.msra.mxu1 %v1427_v14 }
  0x1c   :  { %1211 = vmatprep.subr.bf16.mxu1 %v1327_v13 }
  0x1f   :  { %1213 = vmatpush3.bf16.msra.mxu1 %v1442_v18 }
  0x20   :  { %1223 = vmatprep.subr.bf16.mxu1 %v1327_v13 }
  0x7f   :  { %v359_v44 = vpop.permute.xlu1 %358 }
  0x80   :  { %v276_v37 = vpop.permute.xlu0 %275 }
  0xdd   :  { %v1484_v24 = vpop.f32.mrb[0].mxu1 }
  0xde   :  { %v1486_v25 = vpop.f32.mrb[1].mxu1  ;;  %v1053_v26 = vpop.f32.mrb[0].mxu0 }
  0xdf   :  { %v140_v27 = vpop.f32.mrb[1].mxu0  ;;  %v146_v40 = vadd.f32 %v1053_v26, %v1491_v28  ;;  %v171_v26 = vadd.f32 %v1491_v28, %v1486_v25 }
  0xe0   :  { %v141_v29 = vadd.f32 %v1491_v28, %v140_v27 }
  0xe4   :  { %v1056_v33 = vpop.f32.mrb[2].mxu0 }
  0xe5   :  { %v150_v34 = vpop.f32.mrb[3].mxu0  ;;  %v156_v57 = vadd.f32 %v1056_v33, %v1491_v28 }
  0xe6   :  { %v151_v49 = vadd.f32 %v1491_v28, %v150_v34 }
  0xe8   :  { %v1499_v35 = vpop.f32.mrb[4].mxu0 }
  0xe9   :  { %v1494_v30 = vpop.f32.mrb[2].mxu1  ;;  %v1501_v36 = vpop.f32.mrb[5].mxu0  ;;  %v166_v10 = vadd.f32 %v1499_v35, %v1491_v28 }
  0xea   :  { %v264_v31 = vadd.f32 %v1494_v30, %v141_v29  ;;  %v1077_v32 = vpop.f32.mrb[3].mxu1  ;;  %v161_v1 = vadd.f32 %v1491_v28, %v1501_v36 }
  0xec   :  { %361 = vrot.lane.b32.xlu1 %v264_v31, %s1332_s1  ;;  %279 = vrot.lane.b32.xlu0 %v264_v31, %s1333_s2 }
 0x15e   :  { %v280_v38 = vpop.permute.xlu0 %279  ;;  %v362_v45 = vpop.permute.xlu1 %361 }
 0x15f   :  { %v282_v39 = vsel %vm188_vm4, %v276_v37, %v280_v38  ;;  %v368_v46 = vsel %vm187_vm5, %v359_v44, %v362_v45 }
 0x160   :  { %1091 = vmatmul.mubr.msk.f32.vlgmr.msra.gmra.mrb[6].mxu0 %vm190_vm3, %v282_v39 }
 0x161   :  { %1216 = vmatpush3.bf16.msra.mxu0 %v1410_v9  ;;  %1120 = vmatprep.mubr.msk.f32.mxu0 %vm1328_vm2, %v1329_v17 }
 0x162   :  { %1217 = vmatprep.subr.bf16.mxu0 %v1327_v13 }
 0x165   :  { %1219 = vmatpush3.bf16.msra.mxu0 %v1427_v14 }
 0x166   :  { %1220 = vmatprep.subr.bf16.mxu0 %v1327_v13 }
 0x169   :  { %1222 = vmatpush3.bf16.msra.mxu0 %v1442_v18 }
 0x16a   :  { %1232 = vmatprep.subr.bf16.mxu0 %v1327_v13 }
 0x233   :  { %v1514_v41 = vpop.f32.mrb[6].mxu0 }
 0x234   :  { %v356_v42 = vadd.f32 %v1514_v41, %v146_v40  ;;  %v1092_v43 = vpop.f32.mrb[7].mxu0 }
 0x236   :  { %445 = vrot.lane.b32.xlu1 %v356_v42, %s1332_s1  ;;  %365 = vrot.lane.b32.xlu0 %v356_v42, %s1333_s2 }
 0x2a8   :  { %v366_v47 = vpop.permute.xlu0 %365  ;;  %v446_v53 = vpop.permute.xlu1 %445 }
 0x2a9   :  { %v369_v48 = vsel %vm188_vm4, %v368_v46, %v366_v47  ;;  %v452_v54 = vsel %vm187_vm5, %v264_v31, %v446_v53 }
 0x2aa   :  { %1106 = vmatmul.mubr.msk.f32.vlgmr.msra.gmra.mrb[4].mxu1 %vm190_vm3, %v369_v48 }
 0x2ab   :  { %1225 = vmatpush3.bf16.msra.mxu1 %v1410_v9  ;;  %1135 = vmatprep.mubr.msk.f32.mxu1 %vm1328_vm2, %v1329_v17 }
 0x2ac   :  { %1226 = vmatprep.subr.bf16.mxu1 %v1327_v13 }
 0x2af   :  { %1228 = vmatpush3.bf16.msra.mxu1 %v1427_v14 }
 0x2b0   :  { %1229 = vmatprep.subr.bf16.mxu1 %v1327_v13 }
 0x2b3   :  { %1231 = vmatpush3.bf16.msra.mxu1 %v1442_v18 }
 0x2b4   :  { %1241 = vmatprep.subr.bf16.mxu1 %v1327_v13 }
 0x37d   :  { %v1531_v50 = vpop.f32.mrb[4].mxu1 }
 0x37e   :  { %v443_v51 = vadd.f32 %v1531_v50, %v151_v49  ;;  %v1107_v52 = vpop.f32.mrb[5].mxu1 }
 0x380   :  { %529 = vrot.lane.b32.xlu1 %v443_v51, %s1332_s1  ;;  %449 = vrot.lane.b32.xlu0 %v443_v51, %s1333_s2 }
 0x3f2   :  { %v450_v55 = vpop.permute.xlu0 %449  ;;  %v530_v61 = vpop.permute.xlu1 %529 }
 0x3f3   :  { %v1538_v56 = vsel %vm188_vm4, %v452_v54, %v450_v55  ;;  %v536_v62 = vsel %vm187_vm5, %v356_v42, %v530_v61 }
 0x3f4   :  { %1121 = vmatmul.mubr.msk.f32.vlgmr.msra.gmra.mrb[8].mxu0 %vm190_vm3, %v1538_v56 }
 0x3f5   :  { %1234 = vmatpush3.bf16.msra.mxu0 %v1410_v9  ;;  %1150 = vmatprep.mubr.msk.f32.mxu0 %vm1328_vm2, %v1329_v17 }
 0x3f6   :  { %1235 = vmatprep.subr.bf16.mxu0 %v1327_v13 }
 0x3f9   :  { %1237 = vmatpush3.bf16.msra.mxu0 %v1427_v14 }
 0x3fa   :  { %1238 = vmatprep.subr.bf16.mxu0 %v1327_v13 }
 0x3fd   :  { %1240 = vmatpush3.bf16.msra.mxu0 %v1442_v18 }
 0x3fe   :  { %1250 = vmatprep.subr.bf16.mxu0 %v1327_v13 }
 0x4c7   :  { %v523_v58 = vpop.f32.mrb[8].mxu0 }
 0x4c8   :  { %v1551_v59 = vadd.f32 %v523_v58, %v156_v57  ;;  %v1122_v60 = vpop.f32.mrb[9].mxu0 }
 0x4ca   :  { %613 = vrot.lane.b32.xlu1 %v1551_v59, %s1332_s1  ;;  %533 = vrot.lane.b32.xlu0 %v1551_v59, %s1333_s2 }
 0x53c   :  { %v534_v63 = vpop.permute.xlu0 %533  ;;  %v614_v5 = vpop.permute.xlu1 %613 }
 0x53d   :  { %v537_v0 = vsel %vm188_vm4, %v536_v62, %v534_v63  ;;  %v620_v6 = vsel %vm187_vm5, %v443_v51, %v614_v5 }
 0x53e   :  { %1136 = vmatmul.mubr.msk.f32.vlgmr.msra.gmra.mrb[6].mxu1 %vm190_vm3, %v537_v0 }
 0x53f   :  { %1243 = vmatpush3.bf16.msra.mxu1 %v1410_v9  ;;  %1165 = vmatprep.mubr.msk.f32.mxu1 %vm1328_vm2, %v1329_v17 }
 0x540   :  { %1244 = vmatprep.subr.bf16.mxu1 %v1327_v13 }
 0x543   :  { %1246 = vmatpush3.bf16.msra.mxu1 %v1427_v14 }
 0x544   :  { %1247 = vmatprep.subr.bf16.mxu1 %v1327_v13 }
 0x547   :  { %1249 = vmatpush3.bf16.msra.mxu1 %v1442_v18 }
 0x611   :  { %v607_v2 = vpop.f32.mrb[6].mxu1 }
 0x612   :  { %v611_v3 = vadd.f32 %v607_v2, %v161_v1  ;;  %v1137_v4 = vpop.f32.mrb[7].mxu1 }
 0x614   :  { %697 = vrot.lane.b32.xlu1 %v611_v3, %s1332_s1  ;;  %617 = vrot.lane.b32.xlu0 %v611_v3, %s1333_s2 }
 0x686   :  { %v618_v7 = vpop.permute.xlu0 %617 }
 0x687   :  { %v621_v8 = vsel %vm188_vm4, %v620_v6, %v618_v7 }
 0x688   :  { %1151 = vmatmul.mubr.msk.f32.vlgmr.msra.gmra.mrb[10].mxu0 %vm190_vm3, %v621_v8 }
 0x689   :  { %1252 = vmatpush3.bf16.msra.mxu0 %v1410_v9  ;;  %1180 = vmatprep.mubr.msk.f32.mxu0 %vm1328_vm2, %v1329_v17  ;;  %v970_v9 = vld [vmem:[%s1646_s5] ss:$0 sm:$0xff]  ;;  %s1336_s5 = smov 24  }
 0x68a   :  { %1253 = vmatprep.subr.bf16.mxu0 %v1327_v13 }
 0x68d   :  { %1255 = vmatpush3.bf16.msra.mxu0 %v1427_v14  ;;  %v698_v14 = vpop.permute.xlu1 %697 }
 0x68e   :  { %1256 = vmatprep.subr.bf16.mxu0 %v1327_v13  ;;  %v704_v13 = vsel %vm187_vm5, %v1551_v59, %v698_v14 }
 0x691   :  { %1258 = vmatpush3.bf16.msra.mxu0 %v1442_v18 }
 0x75b   :  { %v691_v11 = vpop.f32.mrb[10].mxu0 }
 0x75c   :  { %v695_v12 = vadd.f32 %v691_v11, %v166_v10  ;;  %v1152_v15 = vpop.f32.mrb[11].mxu0 }
 0x75e   :  { %781 = vrot.lane.b32.xlu1 %v695_v12, %s1332_s1  ;;  %701 = vrot.lane.b32.xlu0 %v695_v12, %s1333_s2 }
 0x762   :  { %270 = vrot.lane.b32.xlu1 %v970_v9, %s1332_s1 }
 0x7d0   :  { %v782_v16 = vpop.permute.xlu1 %781  ;;  %v702_v17 = vpop.permute.xlu0 %701 }
 0x7d1   :  { %v705_v18 = vsel %vm188_vm4, %v704_v13, %v702_v17  ;;  %v788_v25 = vsel %vm187_vm5, %v611_v3, %v782_v16 }
 0x7d2   :  { %1166 = vmatmul.mubr.msk.f32.vlgmr.msra.gmra.mrb[8].mxu1 %vm190_vm3, %v705_v18 }
 0x7d4   :  { %v271_v19 = vpop.permute.xlu1 %270 }
 0x7d5   :  { %v357_v20 = vadd.f32 %v1514_v41, %v271_v19  ;;  %v528_v21 = vadd.f32 %v523_v58, %v271_v19  ;;  %v612_v22 = vadd.f32 %v607_v2, %v271_v19  ;;  %v696_v23 = vadd.f32 %v691_v11, %v271_v19 }
 0x7d6   :  { %v273_v33 = vadd.f32 %v271_v19, %v1494_v30  ;;  %v176_v30 = vadd.f32 %v1484_v24, %v1491_v28  ;;  %v444_v47 = vadd.f32 %v1531_v50, %v271_v19 }
 0x7d7   :  { %896 = vrot.lane.b32.xlu1 %v357_v20, %s1334_s16 }
 0x7db   :  { %900 = vrot.lane.b32.xlu1 %v528_v21, %s1335_s17 }
 0x7df   :  { %904 = vrot.lane.b32.xlu1 %v612_v22, %s1332_s1 }
 0x7e3   :  { %908 = vrot.lane.b32.xlu1 %v696_v23, %s1336_s5 }
 0x849   :  { %v897_v41 = vpop.permute.xlu1 %896 }
 0x84d   :  { %v901_v43 = vpop.permute.xlu1 %900 }
 0x851   :  { %v905_v46 = vpop.permute.xlu1 %904 }
 0x855   :  { %v909_v49 = vpop.permute.xlu1 %908 }
 0x8a5   :  { %v775_v27 = vpop.f32.mrb[8].mxu1 }
 0x8a6   :  { %v779_v29 = vadd.f32 %v775_v27, %v171_v26  ;;  %v780_v31 = vadd.f32 %v775_v27, %v271_v19  ;;  %v1167_v32 = vpop.f32.mrb[9].mxu1 }
 0x8a8   :  { %912 = vrot.lane.b32.xlu1 %v780_v31, %s1333_s2  ;;  %785 = vrot.lane.b32.xlu0 %v779_v29, %s1333_s2 }
 0x8ac   :  { %892 = vrot.lane.b32.xlu0 %v273_v33, %s1331_s27 }
 0x8b0   :  { %865 = vrot.lane.b32.xlu0 %v1551_v59, %s1337_s18 }
 0x8b4   :  { %868 = vrot.lane.b32.xlu0 %v611_v3, %s1338_s19 }
 0x8b8   :  { %871 = vrot.lane.b32.xlu0 %v695_v12, %s1339_s20 }
 0x8bc   :  { %874 = vrot.lane.b32.xlu0 %v779_v29, %s1330_s0 }
 0x91a   :  { %v786_v34 = vpop.permute.xlu0 %785  ;;  %v913_v52 = vpop.permute.xlu1 %912 }
 0x91b   :  { %v789_v35 = vsel %vm188_vm4, %v788_v25, %v786_v34 }
 0x91c   :  { %1181 = vmatmul.mubr.msk.f32.vlgmr.msra.gmra.mrb[12].mxu0 %vm190_vm3, %v789_v35 }
 0x91e   :  { %v893_v40 = vpop.permute.xlu0 %892 }
 0x91f   :  { %v920_v45 = vsel %vm919_vm6, %v893_v40, %v897_v41 }
 0x920   :  { %v921_v24 = vsel %vm187_vm5, %v920_v45, %v444_v47 }
 0x921   :  { %v923_v48 = vsel %vm922_vm7, %v921_v24, %v901_v43 }
 0x922   :  { %v866_v42 = vpop.permute.xlu0 %865  ;;  %v924_v51 = vsel %vm188_vm4, %v923_v48, %v905_v46 }
 0x923   :  { %v881_v54 = vsel %vm190_vm3, %v1538_v56, %v866_v42  ;;  %v926_v55 = vsel %vm925_vm8, %v924_v51, %v909_v49 }
 0x924   :  { %v927_v59 = vsel %vm190_vm3, %v926_v55, %v913_v52 }
 0x926   :  { %v869_v44 = vpop.permute.xlu0 %868 }
 0x927   :  { %v883_v50 = vsel %vm882_vm9, %v881_v54, %v869_v44 }
 0x92a   :  { %v872_v28 = vpop.permute.xlu0 %871 }
 0x92b   :  { %v885_v57 = vsel %vm884_vm10, %v883_v50, %v872_v28 }
 0x92e   :  { %v875_v53 = vpop.permute.xlu0 %874 }
 0x92f   :  { %v887_v58 = vsel %vm886_vm11, %v885_v57, %v875_v53 }
 0x9ef   :  { %v859_v36 = vpop.f32.mrb[12].mxu0 }
 0x9f0   :  { %v863_v37 = vadd.f32 %v859_v36, %v176_v30  ;;  %v864_v38 = vadd.f32 %v859_v36, %v271_v19  ;;  %v1182_v39 = vpop.f32.mrb[13].mxu0 }
 0x9f2   :  { %916 = vrot.lane.b32.xlu1 %v864_v38, %s1340_s21  ;;  %878 = vrot.lane.b32.xlu0 %v863_v37, %s1331_s27 }
 0xa64   :  { %v917_v60 = vpop.permute.xlu1 %916  ;;  %v879_v61 = vpop.permute.xlu0 %878 }
 0xa65   :  { %v929_v62 = vsel %vm928_vm12, %v927_v59, %v917_v60  ;;  %v889_v63 = vsel %vm888_vm13, %v887_v58, %v879_v61 }
 0xa66   :  { %930 = vst.msk [vmem:[#allocation4] sm:$0xff] %vm882_vm9, %v929_v62  ;;  %890 = vst [vmem:[#allocation2] sm:$0xff] %v889_v63 }
 0xa67   :  { %1290 = shalt.err (!%p1287_p4)
}
 0xa68   :  { %s1291_s27 = scalar_lea.hbm %s1647_s6, 128 }
 0xa69   :  { %p1292_p5 = scmp.ne.s32.totalorder %s1647_s6, %s1291_s27  ;;  %p1295_p6 = scmp.lt.u32.totalorder %s1291_s27, %s1647_s6 }
 0xa6b   :  { %p1297_p7 = pnand %p1295_p6, %p1292_p5 }
 0xa6d   :  { %1300 = shalt.err (!%p1297_p7)
}
 0xa6e   :  { %940 = dma.vmem_to_hbm [thread:$0]  %s938_s23, 128, %s1647_s6, [#allocation3]  }
 0xa6f   :  { %s1301_s11 = scalar_lea.vmem %s948_s25, 128  ;;  %p1306_p9 = scmp.lt.s32.totalorder %s948_s25, %s948_s25 }
 0xa70   :  { %p1302_p8 = scmp.ne.s32.totalorder %s948_s25, %s1301_s11  ;;  %p1307_p10 = scmp.lt.s32.totalorder %s1301_s11, %s1301_s11 }
 0xa72   :  { %p1308_p11 = por %p1307_p10, %p1306_p9 }
 0xa74   :  { %p1309_p12 = pnand %p1308_p11, %p1302_p8 }
 0xa76   :  { %1312 = shalt.err (!%p1309_p12)
}
 0xa77   :  { %s1313_s14 = scalar_lea.hbm %s1648_s7, 128 }
 0xa78   :  { %p1314_p13 = scmp.ne.s32.totalorder %s1648_s7, %s1313_s14  ;;  %p1317_p0 = scmp.lt.u32.totalorder %s1313_s14, %s1648_s7 }
 0xa7a   :  { %p1319_p1 = pnand %p1317_p0, %p1314_p13 }
 0xa7c   :  { %1322 = shalt.err (!%p1319_p1)
}
 0xa7d   :  { %950 = dma.vmem_to_hbm [thread:$0]  %s948_s25, 128, %s1648_s7, [#allocation5]  }
 0xa7e   :  { %1323 = dma.done.wait [#allocation3], 128  }
 0xa7f   :  { %1324 = vsyncadd [#allocation3], 4294967168 }
 0xa80   :  { %1325 = dma.done.wait [#allocation5], 128  }
 0xa81   :  { %1326 = vsyncadd [#allocation5], 4294967168 }
 0xa82   :  { %957 = vsyncpa [#allocation3], 1 }
 0xa83   :  { %958 = vsyncpa [#allocation5], 1 }

</bundles_post_ra>
